<compile_context>
chip_gen: v6e
topology: v6e:2x2x1
jax: 0.10.0
libtpu: 0.0.40
codegen_flags: <defaults>
</compile_context>

<pallas_src>
import functools

import jax
import jax.numpy as jnp
from jax.experimental import pallas as pl
from jax.experimental.pallas import tpu as pltpu


def _make_unet_kernel(ndown):
    """Fused U-Net kernel for `ndown` hidden sizes.

    Ref order: x, (w, b) * ndown [down path], (w, b) * ndown [up path], out.
    x / out blocks are [TILE_B, D] (native HBM layout); internal math is in the
    lane-dense [feat, TILE_B] layout (batch on the 128-wide lane axis).
    Weights are in native PyTorch [out, in] layout, pre-cast to bf16; biases
    are [out, 1] f32 (lane-broadcast).
    """

    def kernel(*refs):
        x_ref = refs[0]
        o_ref = refs[-1]
        params = refs[1:-1]

        # [TILE_B, D] -> lane-dense [D, TILE_B] (XLU transpose; also serves as
        # the final skip connection).
        h = x_ref[...].astype(jnp.float32).T
        skips = [h]                              # skips[0] = x (final skip)

        # ---- down / encoder: Linear -> ReLU ----
        for i in range(ndown):
            w = params[2 * i][...]               # [out, in]  bf16 (MXU operand)
            b = params[2 * i + 1][...]           # [out, 1]   f32
            h = jnp.dot(w, h.astype(jnp.bfloat16),
                        preferred_element_type=jnp.float32) + b
            h = jnp.maximum(h, 0.0)
            skips.append(h)

        # ---- up / decoder: Linear -> (+ skip) -> ReLU (except last) ----
        base = 2 * ndown
        for j in range(ndown):
            w = params[base + 2 * j][...]
            b = params[base + 2 * j + 1][...]
            h = jnp.dot(w, h.astype(jnp.bfloat16),
                        preferred_element_type=jnp.float32) + b
            h = h + skips[ndown - 1 - j]         # 'addition' operator (skip)
            if j != ndown - 1:
                h = jnp.maximum(h, 0.0)

        # Back to the native [TILE_B, D] layout for the HBM writeback.
        o_ref[...] = h.T.astype(o_ref.dtype)

    return kernel


def init_linear_unet_params(key, in_out_dim, size_hidden):
    """PyTorch nn.Linear-style init (uniform +/- 1/sqrt(fan_in)).

    Returns [(W, b), ...] with W in the native [out, in] layout pre-cast to
    bf16 (MXU operand dtype) and b as [out, 1] f32 (lane-broadcast in-kernel).
    """
    dims = [in_out_dim] + list(size_hidden)
    ndown = len(size_hidden)
    layer_dims = [(dims[i], dims[i + 1]) for i in range(ndown)]          # down
    layer_dims += [(dims[-i - 1], dims[-i - 2]) for i in range(ndown)]   # up

    params = []
    for fan_in, fan_out in layer_dims:
        key, kw, kb = jax.random.split(key, 3)
        bound = fan_in ** -0.5
        w = jax.random.uniform(kw, (fan_out, fan_in), jnp.float32,
                               minval=-bound, maxval=bound)
        b = jax.random.uniform(kb, (fan_out, 1), jnp.float32,
                               minval=-bound, maxval=bound)
        params.append((w.astype(jnp.bfloat16), b))
    return params


def _choose_tile_b(batch, max_tile_b):
    """Lane-dense batch tile: a multiple of 128, big enough to amortize the
    ~0.35 us per-grid-step overhead, capped for v5e's 16 MiB scoped VMEM, and
    aimed at >= 2 roughly balanced grid steps so v7x megacore can shard the
    batch grid across both TensorCores."""
    half = -(-batch // 2)                      # cdiv(batch, 2)
    tile = -(-half // 128) * 128               # round up to the 128-lane width
    return max(128, min(max_tile_b, tile))


@functools.partial(jax.jit, static_argnames=("ndown", "max_tile_b"))
def linear_unet_forward(x, flat_params, *, ndown, max_tile_b=4096):
    """Whole LinearUNet forward in one Pallas kernel over a 1-D batch grid.

    x: [B, D] (native layout, no host pad/transpose).
    flat_params: [w0, b0, w1, b1, ...] (down then up), w [out, in] bf16,
    b [out, 1] f32.
    """
    B, D = x.shape
    tile_b = _choose_tile_b(B, max_tile_b)
    num_tiles = pl.cdiv(B, tile_b)             # ragged last tile handled by
                                               # Pallas boundary masking

    kernel = _make_unet_kernel(ndown)

    in_specs = [pl.BlockSpec((tile_b, D), lambda i: (i, 0))]
    for p in flat_params:
        # Tiny resident operands: constant block index -> copied into VMEM once
        # and reused on every grid step (no per-step DMA traffic).
        in_specs.append(pl.BlockSpec(p.shape, lambda i: (0, 0)))
    out_spec = pl.BlockSpec((tile_b, D), lambda i: (i, 0))

    return pl.pallas_call(
        kernel,
        out_shape=jax.ShapeDtypeStruct((B, D), x.dtype),
        grid_spec=pltpu.PrefetchScalarGridSpec(
            num_scalar_prefetch=0,
            grid=(num_tiles,),
            in_specs=in_specs,
            out_specs=out_spec,
        ),
        compiler_params=pltpu.CompilerParams(
            dimension_semantics=("parallel",)),   # v7x: batch over both TCs
    )(x, *flat_params)


def linear_unet_reference(x, params, ndown):
    """Pure-JAX reference with identical math (bf16 matmul operands, f32
    accumulation, f32 bias/skip/ReLU) in the same lane-dense layout."""
    h = x.T.astype(jnp.float32)                   # [D, B]
    skips = [h]
    for i in range(ndown):
        w, b = params[i]
        h = jnp.dot(w, h.astype(jnp.bfloat16),
                    preferred_element_type=jnp.float32) + b
        h = jnp.maximum(h, 0.0)
        skips.append(h)
    for j in range(ndown):
        w, b = params[ndown + j]
        h = jnp.dot(w, h.astype(jnp.bfloat16),
                    preferred_element_type=jnp.float32) + b
        h = h + skips[ndown - 1 - j]
        if j != ndown - 1:
            h = jnp.maximum(h, 0.0)
    return h.T


if __name__ == "__main__":
    # LinearUNet(in_out_dim=16, size_hidden=[32, 8]).  batch=300 exercises a
    # 2-step batch grid (tile_b=256) *and* a ragged, non-multiple-of-tile last
    # tile (boundary write masking), while staying small.
    in_out_dim = 16
    size_hidden = [32, 8]
    ndown = len(size_hidden)
    batch = 300

    key = jax.random.PRNGKey(0)
    key, kx = jax.random.split(key)
    x = jax.random.normal(kx, (batch, in_out_dim), jnp.float32)

    params = init_linear_unet_params(key, in_out_dim, size_hidden)
    flat_params = [p for pair in params for p in pair]

    out = linear_unet_forward(x, flat_params, ndown=ndown)
    out = jax.block_until_ready(out)

    ref = linear_unet_reference(x, params, ndown)
    assert out.shape == (batch, in_out_dim)
    assert jnp.allclose(out, ref, atol=1e-3, rtol=1e-3), "mismatch vs reference"

    print("KERNEL_OK")
</pallas_src>

<mosaic_0001>
module attributes {stable_mosaic.version = 11 : i64} {
  func.func @kernel(%arg0: i32, %arg1: memref<256x16xf32, #tpu.memory_space<vmem>>, %arg2: memref<32x16xbf16, #tpu.memory_space<vmem>>, %arg3: memref<32x1xf32, #tpu.memory_space<vmem>>, %arg4: memref<8x32xbf16, #tpu.memory_space<vmem>>, %arg5: memref<8x1xf32, #tpu.memory_space<vmem>>, %arg6: memref<32x8xbf16, #tpu.memory_space<vmem>>, %arg7: memref<32x1xf32, #tpu.memory_space<vmem>>, %arg8: memref<16x32xbf16, #tpu.memory_space<vmem>>, %arg9: memref<16x1xf32, #tpu.memory_space<vmem>>, %arg10: memref<256x16xf32, #tpu.memory_space<vmem>>) attributes {dimension_semantics = [#tpu.dimension_semantics<parallel>], iteration_bounds = array<i64: 2>, scalar_prefetch = 0 : i64, scratch_operands = 0 : i64, tpu.core_type = #tpu.core_type<tc>, window_params = [{transform_indices = @transform_0, window_bounds = array<i64: 256, 16>}, {pipeline_mode = #tpu.pipeline_mode<synchronous>, transform_indices = @transform_1, window_bounds = array<i64: 32, 16>}, {pipeline_mode = #tpu.pipeline_mode<synchronous>, transform_indices = @transform_2, window_bounds = array<i64: 32, 1>}, {pipeline_mode = #tpu.pipeline_mode<synchronous>, transform_indices = @transform_3, window_bounds = array<i64: 8, 32>}, {pipeline_mode = #tpu.pipeline_mode<synchronous>, transform_indices = @transform_4, window_bounds = array<i64: 8, 1>}, {pipeline_mode = #tpu.pipeline_mode<synchronous>, transform_indices = @transform_5, window_bounds = array<i64: 32, 8>}, {pipeline_mode = #tpu.pipeline_mode<synchronous>, transform_indices = @transform_6, window_bounds = array<i64: 32, 1>}, {pipeline_mode = #tpu.pipeline_mode<synchronous>, transform_indices = @transform_7, window_bounds = array<i64: 16, 32>}, {pipeline_mode = #tpu.pipeline_mode<synchronous>, transform_indices = @transform_8, window_bounds = array<i64: 16, 1>}, {transform_indices = @transform_9, window_bounds = array<i64: 256, 16>}]} {
    %c0 = arith.constant 0 : index
    %c0_0 = arith.constant 0 : index
    %0 = vector.load %arg1[%c0, %c0_0] : memref<256x16xf32, #tpu.memory_space<vmem>>, vector<256x16xf32>
    %1 = tpu.transpose %0, [1, 0] : vector<256x16xf32> -> vector<16x256xf32>
    %c0_1 = arith.constant 0 : index
    %c0_2 = arith.constant 0 : index
    %2 = vector.load %arg2[%c0_1, %c0_2] : memref<32x16xbf16, #tpu.memory_space<vmem>>, vector<32x16xbf16>
    %c0_3 = arith.constant 0 : index
    %c0_4 = arith.constant 0 : index
    %3 = vector.load %arg3[%c0_3, %c0_4] : memref<32x1xf32, #tpu.memory_space<vmem>>, vector<32x1xf32>
    %4 = arith.truncf %1 : vector<16x256xf32> to vector<16x256xbf16>
    %cst = arith.constant dense<0.000000e+00> : vector<32x256xf32>
    %5 = tpu.matmul %2, %4, %cst {dimension_numbers = #tpu.dot_dimension_numbers<[1], [0], [0], [1], [0, 0, 1, 1], [], []>} : vector<32x16xbf16>, vector<16x256xbf16>, vector<32x256xf32> -> vector<32x256xf32>
    %6 = vector.broadcast %3 : vector<32x1xf32> to vector<32x256xf32>
    %7 = arith.addf %5, %6 : vector<32x256xf32>
    %cst_5 = arith.constant 0.000000e+00 : f32
    %8 = vector.broadcast %cst_5 : f32 to vector<32x256xf32>
    %9 = arith.maximumf %7, %8 : vector<32x256xf32>
    %c0_6 = arith.constant 0 : index
    %c0_7 = arith.constant 0 : index
    %10 = vector.load %arg4[%c0_6, %c0_7] : memref<8x32xbf16, #tpu.memory_space<vmem>>, vector<8x32xbf16>
    %c0_8 = arith.constant 0 : index
    %c0_9 = arith.constant 0 : index
    %11 = vector.load %arg5[%c0_8, %c0_9] : memref<8x1xf32, #tpu.memory_space<vmem>>, vector<8x1xf32>
    %12 = arith.truncf %9 : vector<32x256xf32> to vector<32x256xbf16>
    %cst_10 = arith.constant dense<0.000000e+00> : vector<8x256xf32>
    %13 = tpu.matmul %10, %12, %cst_10 {dimension_numbers = #tpu.dot_dimension_numbers<[1], [0], [0], [1], [0, 0, 1, 1], [], []>} : vector<8x32xbf16>, vector<32x256xbf16>, vector<8x256xf32> -> vector<8x256xf32>
    %14 = vector.broadcast %11 : vector<8x1xf32> to vector<8x256xf32>
    %15 = arith.addf %13, %14 : vector<8x256xf32>
    %cst_11 = arith.constant 0.000000e+00 : f32
    %16 = vector.broadcast %cst_11 : f32 to vector<8x256xf32>
    %17 = arith.maximumf %15, %16 : vector<8x256xf32>
    %c0_12 = arith.constant 0 : index
    %c0_13 = arith.constant 0 : index
    %18 = vector.load %arg6[%c0_12, %c0_13] : memref<32x8xbf16, #tpu.memory_space<vmem>>, vector<32x8xbf16>
    %c0_14 = arith.constant 0 : index
    %c0_15 = arith.constant 0 : index
    %19 = vector.load %arg7[%c0_14, %c0_15] : memref<32x1xf32, #tpu.memory_space<vmem>>, vector<32x1xf32>
    %20 = arith.truncf %17 : vector<8x256xf32> to vector<8x256xbf16>
    %cst_16 = arith.constant dense<0.000000e+00> : vector<32x256xf32>
    %21 = tpu.matmul %18, %20, %cst_16 {dimension_numbers = #tpu.dot_dimension_numbers<[1], [0], [0], [1], [0, 0, 1, 1], [], []>} : vector<32x8xbf16>, vector<8x256xbf16>, vector<32x256xf32> -> vector<32x256xf32>
    %22 = vector.broadcast %19 : vector<32x1xf32> to vector<32x256xf32>
    %23 = arith.addf %21, %22 : vector<32x256xf32>
    %24 = arith.addf %23, %9 : vector<32x256xf32>
    %cst_17 = arith.constant 0.000000e+00 : f32
    %25 = vector.broadcast %cst_17 : f32 to vector<32x256xf32>
    %26 = arith.maximumf %24, %25 : vector<32x256xf32>
    %c0_18 = arith.constant 0 : index
    %c0_19 = arith.constant 0 : index
    %27 = vector.load %arg8[%c0_18, %c0_19] : memref<16x32xbf16, #tpu.memory_space<vmem>>, vector<16x32xbf16>
    %c0_20 = arith.constant 0 : index
    %c0_21 = arith.constant 0 : index
    %28 = vector.load %arg9[%c0_20, %c0_21] : memref<16x1xf32, #tpu.memory_space<vmem>>, vector<16x1xf32>
    %29 = arith.truncf %26 : vector<32x256xf32> to vector<32x256xbf16>
    %cst_22 = arith.constant dense<0.000000e+00> : vector<16x256xf32>
    %30 = tpu.matmul %27, %29, %cst_22 {dimension_numbers = #tpu.dot_dimension_numbers<[1], [0], [0], [1], [0, 0, 1, 1], [], []>} : vector<16x32xbf16>, vector<32x256xbf16>, vector<16x256xf32> -> vector<16x256xf32>
    %31 = vector.broadcast %28 : vector<16x1xf32> to vector<16x256xf32>
    %32 = arith.addf %30, %31 : vector<16x256xf32>
    %33 = arith.addf %32, %1 : vector<16x256xf32>
    %34 = tpu.transpose %33, [1, 0] : vector<16x256xf32> -> vector<256x16xf32>
    %c0_23 = arith.constant 0 : index
    %c0_24 = arith.constant 0 : index
    %35 = vector.load %arg10[%c0_23, %c0_24] : memref<256x16xf32, #tpu.memory_space<vmem>>, vector<256x16xf32>
    tpu.vector_store %arg10[%c0_23, %c0_24], %34 {strides = array<i32>} : memref<256x16xf32, #tpu.memory_space<vmem>>, vector<256x16xf32>,
    return
  }
  func.func @transform_0(%arg0: i32) -> (i32, i32) {
    %c0_i32 = arith.constant 0 : i32
    %c0_i32_0 = arith.constant 0 : i32
    return %arg0, %c0_i32 : i32, i32
  }
  func.func @transform_1(%arg0: i32) -> (i32, i32) {
    %c0_i32 = arith.constant 0 : i32
    %c0_i32_0 = arith.constant 0 : i32
    %c0_i32_1 = arith.constant 0 : i32
    return %c0_i32, %c0_i32_0 : i32, i32
  }
  func.func @transform_2(%arg0: i32) -> (i32, i32) {
    %c0_i32 = arith.constant 0 : i32
    %c0_i32_0 = arith.constant 0 : i32
    %c0_i32_1 = arith.constant 0 : i32
    return %c0_i32, %c0_i32_0 : i32, i32
  }
  func.func @transform_3(%arg0: i32) -> (i32, i32) {
    %c0_i32 = arith.constant 0 : i32
    %c0_i32_0 = arith.constant 0 : i32
    %c0_i32_1 = arith.constant 0 : i32
    return %c0_i32, %c0_i32_0 : i32, i32
  }
  func.func @transform_4(%arg0: i32) -> (i32, i32) {
    %c0_i32 = arith.constant 0 : i32
    %c0_i32_0 = arith.constant 0 : i32
    %c0_i32_1 = arith.constant 0 : i32
    return %c0_i32, %c0_i32_0 : i32, i32
  }
  func.func @transform_5(%arg0: i32) -> (i32, i32) {
    %c0_i32 = arith.constant 0 : i32
    %c0_i32_0 = arith.constant 0 : i32
    %c0_i32_1 = arith.constant 0 : i32
    return %c0_i32, %c0_i32_0 : i32, i32
  }
  func.func @transform_6(%arg0: i32) -> (i32, i32) {
    %c0_i32 = arith.constant 0 : i32
    %c0_i32_0 = arith.constant 0 : i32
    %c0_i32_1 = arith.constant 0 : i32
    return %c0_i32, %c0_i32_0 : i32, i32
  }
  func.func @transform_7(%arg0: i32) -> (i32, i32) {
    %c0_i32 = arith.constant 0 : i32
    %c0_i32_0 = arith.constant 0 : i32
    %c0_i32_1 = arith.constant 0 : i32
    return %c0_i32, %c0_i32_0 : i32, i32
  }
  func.func @transform_8(%arg0: i32) -> (i32, i32) {
    %c0_i32 = arith.constant 0 : i32
    %c0_i32_0 = arith.constant 0 : i32
    %c0_i32_1 = arith.constant 0 : i32
    return %c0_i32, %c0_i32_0 : i32, i32
  }
  func.func @transform_9(%arg0: i32) -> (i32, i32) {
    %c0_i32 = arith.constant 0 : i32
    %c0_i32_0 = arith.constant 0 : i32
    return %arg0, %c0_i32 : i32, i32
  }
}

</mosaic_0001>

<bundles_post_ra>
// kernel: linear_unet_forward.1
= control target key start
LH: loop header
LB: loop body
LE: loop exit
PB: predicated region body
PF: predicated region fallthrough
CT: control target
= control target key end

     0   :  { %s1524_s30 = smov 0   ;;  %s1526_s10 = smov 0   ;;  %s1908_s0 = inlined_call_operand.vmem [shape: f32[300,16], index: 0, kind: input, shape index: {}]   ;;  %s1909_s1 = inlined_call_operand.vmem [shape: bf16[32,16], index: 1, kind: input, shape index: {}]   ;;  %s1910_s2 = inlined_call_operand.vmem [shape: f32[32,1], index: 2, kind: input, shape index: {}]   ;;  %s1911_s3 = inlined_call_operand.vmem [shape: bf16[8,32], index: 3, kind: input, shape index: {}]   ;;  %s1912_s4 = inlined_call_operand.vmem [shape: f32[8,1], index: 4, kind: input, shape index: {}]   ;;  %s1913_s5 = inlined_call_operand.vmem [shape: bf16[32,8], index: 5, kind: input, shape index: {}]   ;;  %s1914_s6 = inlined_call_operand.vmem [shape: f32[32,1], index: 6, kind: input, shape index: {}]   ;;  %s1915_s7 = inlined_call_operand.vmem [shape: bf16[16,32], index: 7, kind: input, shape index: {}]   ;;  %s1916_s8 = inlined_call_operand.vmem [shape: f32[16,1], index: 8, kind: input, shape index: {}]   ;;  %s1917_s9 = inlined_call_operand.vmem [shape: f32[300,16], index: 9, kind: output, shape index: {}]  }
   0x1   :  { %s1528_s11 = smov 0  }
   0x2 LB: > { %s1537_s12 = sadd.s32 4294967295, %s1439_s11   ;;  %s1539_s13 = sadd.s32 1, %s1439_s11   ;;  %s1439_s11 = sphi %s1528_s11, %s1926_s11   ;;  %s1435_s10 = sphi %s1526_s10, %s1925_s10   ;;  %s1431_s30 = sphi %s1524_s30, %s1924_s30  }
   0x3   : > { %s217_s14 = ssub.s32 %s1439_s11, %s1539_s13  ;;  %s220_s15 = sadd.s32 1, %s1435_s10 }
   0x4   : > { %p218_p0 = scmp.eq.s32.totalorder %s217_s14, 0  ;;  %p230_p1 = scmp.ne.s32.totalorder %s1435_s10, %s1431_s30 }
   0x5   : > { %p231_p2 = scmp.eq.s32.totalorder %s1537_s12, 1  ;;  %p1252_p3 = scmp.ge.s32.totalorder %s1439_s11, 1 }
   0x6   : > { %s1547_s16 = scalar_select %p218_p0, %s1435_s10, %s220_s15  }
   0x7   : > { %p1549_p4 = por %p231_p2, %p230_p1  ;;  %p296_p5 = scmp.lt.s32.totalorder %s1439_s11, 3 }
   0x9   : > { %p297_p6 = pnand %p1252_p3, %p296_p5 }
   0xa   : > { %s1554_s18 = sshll.u32 (!%p297_p6), %s1537_s12, 5  ;;  %s332_s11 = sand.u32 (!%p297_p6), 1, %s1431_s30  }
   0xb   : > { %300 = sbr.rel (%p297_p6) target bundleno = 1238 (0x4d6), region = 56  ;;  %p340_p7 = scmp.lt.s32.totalorder (!%p297_p6), %s1554_s18, 37 }
   0xc   : > { %s1253_s14 = sshll.u32 (!%p297_p6), %s332_s11, 8 }
   0xd   : > { %s1703_s15 = scalar_lea.vmem (!%p297_p6), [#allocation2], %s1253_s14  }
  0x10   : > { %s341_s19 = scalar_select %p340_p7, %s1554_s18, 37  ;;  %v1473_v6 = vmov 0   ;;  %v458_v33 = vld [vmem:[%s1910_s2 + $0x18] sm:$0xff]  ;;  %v455_v34 = vld [vmem:[%s1910_s2] sm:$0xff]  ;;  %v456_v35 = vld [vmem:[%s1910_s2 + $0x8] sm:$0xff]  ;;  %vm491_vm0 = vcmask 130048  }
  0x11   : > { %530 = vmatprep.mubr.bf16.mxu0 %v1473_v6  ;;  %606 = vmatprep.mubr.bf16.mxu1 %v1473_v6  ;;  %v457_v36 = vld [vmem:[%s1910_s2 + $0x10] sm:$0xff]  ;;  %v560_v37 = vld [vmem:[%s1912_s4] sm:$0xff]  ;;  %v624_v39 = vld [vmem:[%s1914_s6 + $0x18] sm:$0xff]  ;;  %vm570_vm1 = vcmask 261120   ;;  %vm664_vm2 = vcmask 1043456   ;;  %vm657_vm3 = vcmask 64512  }
  0x12   : > { %s1255_s20 = sshll.u32 %s341_s19, 3  ;;  %v623_v38 = vld [vmem:[%s1914_s6 + $0x10] sm:$0xff]  ;;  %v621_v40 = vld [vmem:[%s1914_s6] sm:$0xff]  ;;  %v622_v41 = vld [vmem:[%s1914_s6 + $0x8] sm:$0xff]  ;;  %s917_s30 = ssub.s32 (%p1549_p4), 38, %s1554_s18 }
  0x13   : > { %s1561_s23 = scalar_lea.vmem %s1908_s0, %s1255_s20  ;;  %v742_v42 = vld [vmem:[%s1916_s8] sm:$0xff]  ;;  %v743_v43 = vld [vmem:[%s1916_s8 + $0x8] sm:$0xff]  ;;  %s1285_s19 = sshll.u32 (%p1549_p4), %s1537_s12, 8 }
  0x14   : > { %v371_v0 = vld [vmem:[%s1561_s23 + $0x80] sm:$0xff]  ;;  %v372_v2 = vld [vmem:[%s1561_s23 + $0x88] sm:$0xff]  ;;  %v373_v4 = vld [vmem:[%s1561_s23 + $0x90] sm:$0xff]  ;;  %p918_p8 = scmp.lt.s32.totalorder (%p1549_p4), %s917_s30, 32  ;;  %s1776_s22 = scalar_lea.vmem (%p1549_p4), %s1917_s9, %s1285_s19  }
  0x15   : > { %v355_v1 = vld [vmem:[%s1561_s23] sm:$0xff]  ;;  %419 = vxpose.xlu0.b32.start [1/16] (narrow) %v371_v0, 16  ;;  %v356_v3 = vld [vmem:[%s1561_s23 + $0x8] sm:$0xff]  ;;  %v357_v5 = vld [vmem:[%s1561_s23 + $0x10] sm:$0xff] }
  0x16   : > { %387 = vxpose.xlu1.b32.start [1/16] (narrow) %v355_v1, 16  ;;  %v374_v7 = vld [vmem:[%s1561_s23 + $0x98] sm:$0xff]  ;;  %v375_v9 = vld [vmem:[%s1561_s23 + $0xa0] sm:$0xff]  ;;  %v376_v11 = vld [vmem:[%s1561_s23 + $0xa8] sm:$0xff] }
  0x17   : > { %v358_v8 = vld [vmem:[%s1561_s23 + $0x18] sm:$0xff]  ;;  %v359_v10 = vld [vmem:[%s1561_s23 + $0x20] sm:$0xff]  ;;  %v360_v12 = vld [vmem:[%s1561_s23 + $0x28] sm:$0xff] }
  0x18   : > { %v377_v13 = vld [vmem:[%s1561_s23 + $0xb0] sm:$0xff]  ;;  %v378_v15 = vld [vmem:[%s1561_s23 + $0xb8] sm:$0xff]  ;;  %v379_v17 = vld [vmem:[%s1561_s23 + $0xc0] sm:$0xff] }
  0x19   : > { %420 = vxpose.xlu0.b32.cont [2/16] (narrow) %v372_v2, 16  ;;  %v361_v14 = vld [vmem:[%s1561_s23 + $0x30] sm:$0xff]  ;;  %v362_v16 = vld [vmem:[%s1561_s23 + $0x38] sm:$0xff]  ;;  %v363_v18 = vld [vmem:[%s1561_s23 + $0x40] sm:$0xff] }
  0x1a   : > { %388 = vxpose.xlu1.b32.cont [2/16] (narrow) %v356_v3, 16  ;;  %v380_v19 = vld [vmem:[%s1561_s23 + $0xc8] sm:$0xff]  ;;  %v381_v21 = vld [vmem:[%s1561_s23 + $0xd0] sm:$0xff]  ;;  %v382_v23 = vld [vmem:[%s1561_s23 + $0xd8] sm:$0xff] }
  0x1b   : > { %v364_v20 = vld [vmem:[%s1561_s23 + $0x48] sm:$0xff]  ;;  %v365_v22 = vld [vmem:[%s1561_s23 + $0x50] sm:$0xff]  ;;  %v366_v24 = vld [vmem:[%s1561_s23 + $0x58] sm:$0xff] }
  0x1c   : > { %v383_v25 = vld [vmem:[%s1561_s23 + $0xe0] sm:$0xff]  ;;  %v384_v27 = vld [vmem:[%s1561_s23 + $0xe8] sm:$0xff]  ;;  %v385_v29 = vld [vmem:[%s1561_s23 + $0xf0] sm:$0xff] }
  0x1d   : > { %421 = vxpose.xlu0.b32.cont [3/16] (narrow) %v373_v4, 16  ;;  %v367_v26 = vld [vmem:[%s1561_s23 + $0x60] sm:$0xff]  ;;  %v368_v28 = vld [vmem:[%s1561_s23 + $0x68] sm:$0xff]  ;;  %v369_v30 = vld [vmem:[%s1561_s23 + $0x70] sm:$0xff] }
  0x1e   : > { %389 = vxpose.xlu1.b32.cont [3/16] (narrow) %v357_v5, 16  ;;  %v386_v31 = vld [vmem:[%s1561_s23 + $0xf8] sm:$0xff]  ;;  %v1380_v50 = vld [vmem:[%s1909_s1] sm:$0xff]   ;;  %v1381_v51 = vld [vmem:[%s1909_s1 + $0x8] sm:$0xff]  }
  0x1f   : > { %v370_v32 = vld [vmem:[%s1561_s23 + $0x78] sm:$0xff] }
  0x21   : > { %422 = vxpose.xlu0.b32.cont [4/16] (narrow) %v374_v7, 16 }
  0x22   : > { %390 = vxpose.xlu1.b32.cont [4/16] (narrow) %v358_v8, 16 }
  0x25   : > { %423 = vxpose.xlu0.b32.cont [5/16] (narrow) %v375_v9, 16 }
  0x26   : > { %391 = vxpose.xlu1.b32.cont [5/16] (narrow) %v359_v10, 16 }
  0x29   : > { %424 = vxpose.xlu0.b32.cont [6/16] (narrow) %v376_v11, 16 }
  0x2a   : > { %392 = vxpose.xlu1.b32.cont [6/16] (narrow) %v360_v12, 16 }
  0x2d   : > { %425 = vxpose.xlu0.b32.cont [7/16] (narrow) %v377_v13, 16 }
  0x2e   : > { %393 = vxpose.xlu1.b32.cont [7/16] (narrow) %v361_v14, 16 }
  0x31   : > { %426 = vxpose.xlu0.b32.cont [8/16] (narrow) %v378_v15, 16 }
  0x32   : > { %394 = vxpose.xlu1.b32.cont [8/16] (narrow) %v362_v16, 16 }
  0x35   : > { %427 = vxpose.xlu0.b32.cont [9/16] (narrow) %v379_v17, 16 }
  0x36   : > { %395 = vxpose.xlu1.b32.cont [9/16] (narrow) %v363_v18, 16 }
  0x39   : > { %428 = vxpose.xlu0.b32.cont [10/16] (narrow) %v380_v19, 16 }
  0x3a   : > { %396 = vxpose.xlu1.b32.cont [10/16] (narrow) %v364_v20, 16 }
  0x3d   : > { %429 = vxpose.xlu0.b32.cont [11/16] (narrow) %v381_v21, 16  ;;  %v559_v21 = vld [vmem:[%s1911_s3] sm:$0xf] }
  0x3e   : > { %397 = vxpose.xlu1.b32.cont [11/16] (narrow) %v365_v22, 16 }
  0x41   : > { %430 = vxpose.xlu0.b32.cont [12/16] (narrow) %v382_v23, 16 }
  0x42   : > { %398 = vxpose.xlu1.b32.cont [12/16] (narrow) %v366_v24, 16 }
  0x45   : > { %431 = vxpose.xlu0.b32.cont [13/16] (narrow) %v383_v25, 16 }
  0x46   : > { %399 = vxpose.xlu1.b32.cont [13/16] (narrow) %v367_v26, 16 }
  0x49   : > { %432 = vxpose.xlu0.b32.cont [14/16] (narrow) %v384_v27, 16 }
  0x4a   : > { %400 = vxpose.xlu1.b32.cont [14/16] (narrow) %v368_v28, 16 }
  0x4d   : > { %433 = vxpose.xlu0.b32.cont [15/16] (narrow) %v385_v29, 16 }
  0x4e   : > { %401 = vxpose.xlu1.b32.cont [15/16] (narrow) %v369_v30, 16 }
  0x51   : > { %434 = vxpose.xlu0.b32.end [16/16] (narrow) %v386_v31, 16 }
  0x52   : > { %402 = vxpose.xlu1.b32.end [16/16] (narrow) %v370_v32, 16 }
  0x70   : > { %1379 = vset.pattern.permute.xlu1 %v1473_v6 }
  0x71   : > { %478 = vperm.xlu1 %1379, %v458_v33  }
  0x75   : > { %463 = vperm.xlu1 %1379, %v455_v34   ;;  %v1382_v34 = vld [vmem:[%s1913_s5] sm:$0xff]  }
  0x79   : > { %468 = vperm.xlu1 %1379, %v456_v35   ;;  %v1383_v35 = vld [vmem:[%s1913_s5 + $0x8] sm:$0xff]  }
  0x7a   : > { %1378 = vset.pattern.permute.xlu0 %v1473_v6 }
  0x7b   : > { %473 = vperm.xlu0 %1378, %v457_v36  }
  0x7d   : > { %567 = vperm.xlu1 %1379, %v560_v37  }
  0x7f   : > { %639 = vperm.xlu0 %1378, %v623_v38  }
  0x81   : > { %644 = vperm.xlu1 %1379, %v624_v39  }
  0x83   : > { %629 = vperm.xlu0 %1378, %v621_v40  }
  0x85   : > { %634 = vperm.xlu1 %1379, %v622_v41  }
  0x87   : > { %750 = vperm.xlu0 %1378, %v742_v42  }
  0x89   : > { %755 = vperm.xlu1 %1379, %v743_v43  }
  0x91   : > { %v1632_v44 = vpop.trf.xlu0 }
  0x92   : > { %v1634_v45 = vpop.trf.xlu1 }
  0x95   : > { %v1636_v46 = vpop.trf.xlu0 }
  0x96   : > { %v1638_v47 = vpop.trf.xlu1  ;;  %v460_v48 = vpack.c.bf16 %v1636_v46, %v1632_v44 }
  0x97   : > { %v459_v49 = vpack.c.bf16 %v1638_v47, %v1634_v45 }
  0x98   : > { %512 = vmatprep.subr.bf16.mxu0 %v460_v48 }
  0x99   : > { %513 = vmatpush1.bf16.msra.mxu0 %v459_v49 }
  0x9c   : > { %1258 = vmatmul.mubr.msk.bf16.vlgmr.msra.gmra.mxu0 %vm491_vm0, %v1380_v50 }
  0x9d   : > { %540 = vmatprep.mubr.bf16.mxu0 %v1473_v6 }
  0xa4   : > { %1259 = vmatmul.mubr.msk.bf16.gmra.mxu0 %vm491_vm0, %v1381_v51 }
  0xa5   : > { %798 = vmatprep.mubr.bf16.mxu0 %v1473_v6 }
  0xec   : > { %v479_v52 = vpop.permute.xlu1 %478 }
  0xf0   : > { %v464_v56 = vpop.permute.xlu1 %463 }
  0xf4   : > { %v469_v60 = vpop.permute.xlu1 %468 }
  0xf6   : > { %v474_v61 = vpop.permute.xlu0 %473 }
  0xf8   : > { %v568_v22 = vpop.permute.xlu1 %567 }
  0xfa   : > { %v640_v40 = vpop.permute.xlu0 %639 }
  0xfc   : > { %v645_v38 = vpop.permute.xlu1 %644 }
  0xfe   : > { %v630_v51 = vpop.permute.xlu0 %629 }
 0x100   : > { %v635_v43 = vpop.permute.xlu1 %634 }
 0x15c   : > { %v532_v53 = vpop.f32.mrf.mxu0 }
 0x15d   : > { %v1672_v12 = vadd.f32 %v532_v53, %v464_v56 }
 0x15e   : > { %v534_v54 = vpop.f32.mrf.mxu0 }
 0x15f   : > { %v1662_v4 = vadd.f32 %v534_v54, %v464_v56  ;;  %v551_v19 = vmax.f32 %v1672_v12, 0.0 }
 0x160   : > { %v536_v55 = vpop.f32.mrf.mxu0 }
 0x161   : > { %v1666_v7 = vadd.f32 %v536_v55, %v469_v60  ;;  %v552_v14 = vmax.f32 %v1662_v4, 0.0 }
 0x162   : > { %v538_v57 = vpop.f32.mrf.mxu0 }
 0x163   : > { %v1654_v63 = vadd.f32 %v538_v57, %v469_v60  ;;  %v553_v16 = vmax.f32 %v1666_v7, 0.0 }
 0x164   : > { %v542_v58 = vpop.f32.mrf.mxu0 }
 0x165   : > { %v1660_v2 = vadd.f32 %v542_v58, %v474_v61  ;;  %v554_v9 = vmax.f32 %v1654_v63, 0.0  ;;  %v561_v20 = vpack.c.bf16 %v553_v16, %v551_v19 }
 0x166   : > { %v544_v59 = vpop.f32.mrf.mxu0 }
 0x167   : > { %v1656_v0 = vadd.f32 %v544_v59, %v474_v61  ;;  %v555_v13 = vmax.f32 %v1660_v2, 0.0  ;;  %v562_v18 = vpack.c.bf16 %v554_v9, %v552_v14 }
 0x168   : > { %v546_v62 = vpop.f32.mrf.mxu0 }
 0x169   : > { %v1658_v1 = vadd.f32 %v546_v62, %v479_v52  ;;  %v556_v10 = vmax.f32 %v1656_v0, 0.0 }
 0x16a   : > { %v548_v3 = vpop.f32.mrf.mxu0 }
 0x16b   : > { %v1664_v5 = vadd.f32 %v548_v3, %v479_v52  ;;  %v557_v8 = vmax.f32 %v1658_v1, 0.0 }
 0x16d   : > { %v558_v11 = vmax.f32 %v1664_v5, 0.0  ;;  %v563_v17 = vpack.c.bf16 %v557_v8, %v555_v13  ;;  %v1384_v5 = vld [vmem:[%s1915_s7] sm:$0xff]  }
 0x16f   : > { %v564_v15 = vpack.c.bf16 %v558_v11, %v556_v10 }
 0x171   : > { %586 = vmatprep.subr.bf16.mxu1 %v564_v15 }
 0x172   : > { %587 = vmatpush1.bf16.msra.mxu1 %v563_v17 }
 0x173   : > { %588 = vmatprep.subr.bf16.mxu1 %v562_v18 }
 0x176   : > { %589 = vmatpush1.bf16.msra.mxu1 %v561_v20 }
 0x179   : > { %1260 = vmatmul.mubr.msk.bf16.vlgmr.msra.gmra.mxu1 %vm570_vm1, %v559_v21 }
 0x17a   : > { %703 = vmatprep.mubr.bf16.mxu1 %v1473_v6 }
 0x239   : > { %v608_v23 = vpop.f32.mrf.mxu1 }
 0x23a   : > { %v609_v24 = vadd.f32 %v608_v23, %v568_v22  ;;  %v756_v23 = vpop.permute.xlu1 %755 }
 0x23b   : > { %v610_v25 = vpop.f32.mrf.mxu1 }
 0x23c   : > { %v615_v26 = vmax.f32 %v609_v24, 0.0  ;;  %v611_v27 = vadd.f32 %v610_v25, %v568_v22 }
 0x23d   : > { %v612_v28 = vpop.f32.mrf.mxu1 }
 0x23e   : > { %v625_v29 = vpack.c.bf16 %v615_v26, %v615_v26  ;;  %v616_v30 = vmax.f32 %v611_v27, 0.0 }
 0x23f   : > { %v613_v31 = vpop.f32.mrf.mxu1 }
 0x240   : > { %v626_v32 = vpack.c.bf16 %v616_v30, %v616_v30  ;;  %v666_v33 = vsel %vm664_vm2, %v625_v29, 0 }
 0x242   : > { %1263 = vmatprep.subr.msk.bf16.mxu1 %vm664_vm2, %v626_v32 }
 0x243   : > { %686 = vmatpush1.bf16.msra.mxu1 %v666_v33 }
 0x246   : > { %1264 = vmatmul.mubr.msk.bf16.vlgmr.msra.gmra.mxu1 %vm657_vm3, %v1382_v34 }
 0x247   : > { %713 = vmatprep.mubr.bf16.mxu1 %v1473_v6 }
 0x24e   : > { %1265 = vmatmul.mubr.msk.bf16.gmra.mxu1 %vm657_vm3, %v1383_v35 }
 0x306   : > { %v705_v36 = vpop.f32.mrf.mxu1 }
 0x307   : > { %v706_v61 = vadd.f32 %v705_v36, %v630_v51 }
 0x308   : > { %v707_v37 = vpop.f32.mrf.mxu1 }
 0x309   : > { %v708_v6 = vadd.f32 %v707_v37, %v630_v51  ;;  %v724_v12 = vadd.f32 %v706_v61, %v551_v19 }
 0x30a   : > { %v709_v39 = vpop.f32.mrf.mxu1 }
 0x30b   : > { %v710_v55 = vadd.f32 %v709_v39, %v635_v43  ;;  %v725_v63 = vadd.f32 %v708_v6, %v552_v14 }
 0x30c   : > { %v711_v41 = vpop.f32.mrf.mxu1 }
 0x30d   : > { %v712_v49 = vadd.f32 %v711_v41, %v635_v43  ;;  %v726_v1 = vadd.f32 %v710_v55, %v553_v16  ;;  %v733_v17 = vmax.f32 %v725_v63, 0.0 }
 0x30e   : > { %v715_v42 = vpop.f32.mrf.mxu1 }
 0x30f   : > { %v716_v52 = vadd.f32 %v715_v42, %v640_v40  ;;  %v727_v57 = vadd.f32 %v712_v49, %v554_v9  ;;  %v734_v20 = vmax.f32 %v726_v1, 0.0 }
 0x310   : > { %v717_v48 = vpop.f32.mrf.mxu1 }
 0x311   : > { %v718_v50 = vadd.f32 %v717_v48, %v640_v40  ;;  %v728_v62 = vadd.f32 %v716_v52, %v555_v13  ;;  %v735_v3 = vmax.f32 %v727_v57, 0.0 }
 0x312   : > { %v719_v53 = vpop.f32.mrf.mxu1 }
 0x313   : > { %v720_v54 = vadd.f32 %v719_v53, %v645_v38  ;;  %v729_v58 = vadd.f32 %v718_v50, %v556_v10  ;;  %v736_v15 = vmax.f32 %v728_v62, 0.0  ;;  %v732_v10 = vmax.f32 %v724_v12, 0.0 }
 0x314   : > { %v721_v56 = vpop.f32.mrf.mxu1 }
 0x315   : > { %v730_v59 = vadd.f32 %v720_v54, %v557_v8  ;;  %v722_v60 = vadd.f32 %v721_v56, %v645_v38  ;;  %v737_v4 = vmax.f32 %v729_v58, 0.0  ;;  %v745_v8 = vpack.c.bf16 %v735_v3, %v733_v17 }
 0x316   : > { %v744_v13 = vpack.c.bf16 %v734_v20, %v732_v10 }
 0x317   : > { %v731_v0 = vadd.f32 %v722_v60, %v558_v11  ;;  %v738_v2 = vmax.f32 %v730_v59, 0.0  ;;  %v751_v11 = vpop.permute.xlu0 %750 }
 0x319   : > { %v739_v7 = vmax.f32 %v731_v0, 0.0  ;;  %v746_v9 = vpack.c.bf16 %v738_v2, %v736_v15 }
 0x31b   : > { %v747_v18 = vpack.c.bf16 %v739_v7, %v737_v4 }
 0x31d   : > { %778 = vmatprep.subr.bf16.mxu0 %v747_v18 }
 0x31e   : > { %779 = vmatpush1.bf16.msra.mxu0 %v746_v9 }
 0x31f   : > { %780 = vmatprep.subr.bf16.mxu0 %v745_v8 }
 0x322   : > { %781 = vmatpush1.bf16.msra.mxu0 %v744_v13 }
 0x325   : > { %1267 = vmatmul.mubr.msk.bf16.vlgmr.msra.gmra.mxu0 %vm570_vm1, %v1384_v5 }
 0x3e5   : > { %v800_v14 = vpop.f32.mrf.mxu0 }
 0x3e6   : > { %v801_v16 = vadd.f32 %v800_v14, %v751_v11 }
 0x3e7   : > { %v802_v19 = vpop.f32.mrf.mxu0 }
 0x3e8   : > { %v809_v21 = vadd.f32 %v801_v16, %v1634_v45  ;;  %v803_v22 = vadd.f32 %v802_v19, %v751_v11 }
 0x3e9   : > { %v804_v24 = vpop.f32.mrf.mxu0 }
 0x3ea   : > { %v810_v25 = vadd.f32 %v803_v22, %v1632_v44  ;;  %v805_v26 = vadd.f32 %v804_v24, %v756_v23  ;;  %813 = vxpose.xlu0.b32.start [1/2] (short) %v809_v21, 128 }
 0x3eb   : > { %v806_v27 = vpop.f32.mrf.mxu0 }
 0x3ec   : > { %v811_v28 = vadd.f32 %v805_v26, %v1638_v47  ;;  %v807_v29 = vadd.f32 %v806_v27, %v756_v23  ;;  %845 = vxpose.xlu1.b32.start [1/2] (short) %v810_v25, 128 }
 0x3ee   : > { %v812_v30 = vadd.f32 %v807_v29, %v1636_v46  ;;  %814 = vxpose.xlu0.b32.end [2/2] (short) %v811_v28, 128 }
 0x3f0   : > { %846 = vxpose.xlu1.b32.end [2/2] (short) %v812_v30, 128 }
 0x466   : > { %v829_v31 = vpop.trf.xlu0 }
 0x467   : > { %877 = vst.msk [vmem:[%s1703_s15] sm:$0xff] %vm491_vm0, %v829_v31 }
 0x468   : > { %v861_v44 = vpop.trf.xlu1 }
 0x469   : > { %893 = vst.msk [vmem:[%s1703_s15 + $0x80] sm:$0xff] %vm491_vm0, %v861_v44 }
 0x46a   : > { %v830_v45 = vpop.trf.xlu0 }
 0x46b   : > { %878 = vst.msk [vmem:[%s1703_s15 + $0x8] sm:$0xff] %vm491_vm0, %v830_v45 }
 0x46c   : > { %v862_v46 = vpop.trf.xlu1 }
 0x46d   : > { %894 = vst.msk [vmem:[%s1703_s15 + $0x88] sm:$0xff] %vm491_vm0, %v862_v46 }
 0x46e   : > { %v831_v47 = vpop.trf.xlu0 }
 0x46f   : > { %879 = vst.msk [vmem:[%s1703_s15 + $0x10] sm:$0xff] %vm491_vm0, %v831_v47 }
 0x470   : > { %v863_v32 = vpop.trf.xlu1 }
 0x471   : > { %895 = vst.msk [vmem:[%s1703_s15 + $0x90] sm:$0xff] %vm491_vm0, %v863_v32 }
 0x472   : > { %v832_v33 = vpop.trf.xlu0 }
 0x473   : > { %880 = vst.msk [vmem:[%s1703_s15 + $0x18] sm:$0xff] %vm491_vm0, %v832_v33 }
 0x474   : > { %v864_v34 = vpop.trf.xlu1 }
 0x475   : > { %896 = vst.msk [vmem:[%s1703_s15 + $0x98] sm:$0xff] %vm491_vm0, %v864_v34 }
 0x476   : > { %v833_v35 = vpop.trf.xlu0 }
 0x477   : > { %881 = vst.msk [vmem:[%s1703_s15 + $0x20] sm:$0xff] %vm491_vm0, %v833_v35 }
 0x478   : > { %v865_v36 = vpop.trf.xlu1 }
 0x479   : > { %897 = vst.msk [vmem:[%s1703_s15 + $0xa0] sm:$0xff] %vm491_vm0, %v865_v36 }
 0x47a   : > { %v834_v37 = vpop.trf.xlu0 }
 0x47b   : > { %882 = vst.msk [vmem:[%s1703_s15 + $0x28] sm:$0xff] %vm491_vm0, %v834_v37 }
 0x47c   : > { %v866_v38 = vpop.trf.xlu1 }
 0x47d   : > { %898 = vst.msk [vmem:[%s1703_s15 + $0xa8] sm:$0xff] %vm491_vm0, %v866_v38 }
 0x47e   : > { %v835_v39 = vpop.trf.xlu0 }
 0x47f   : > { %883 = vst.msk [vmem:[%s1703_s15 + $0x30] sm:$0xff] %vm491_vm0, %v835_v39 }
 0x480   : > { %v867_v40 = vpop.trf.xlu1 }
 0x481   : > { %899 = vst.msk [vmem:[%s1703_s15 + $0xb0] sm:$0xff] %vm491_vm0, %v867_v40 }
 0x482   : > { %v836_v41 = vpop.trf.xlu0 }
 0x483   : > { %884 = vst.msk [vmem:[%s1703_s15 + $0x38] sm:$0xff] %vm491_vm0, %v836_v41 }
 0x484   : > { %v868_v42 = vpop.trf.xlu1 }
 0x485   : > { %900 = vst.msk [vmem:[%s1703_s15 + $0xb8] sm:$0xff] %vm491_vm0, %v868_v42 }
 0x486   : > { %v837_v43 = vpop.trf.xlu0 }
 0x487   : > { %885 = vst.msk [vmem:[%s1703_s15 + $0x40] sm:$0xff] %vm491_vm0, %v837_v43 }
 0x488   : > { %v869_v48 = vpop.trf.xlu1 }
 0x489   : > { %901 = vst.msk [vmem:[%s1703_s15 + $0xc0] sm:$0xff] %vm491_vm0, %v869_v48 }
 0x48a   : > { %v838_v49 = vpop.trf.xlu0 }
 0x48b   : > { %886 = vst.msk [vmem:[%s1703_s15 + $0x48] sm:$0xff] %vm491_vm0, %v838_v49 }
 0x48c   : > { %v870_v50 = vpop.trf.xlu1 }
 0x48d   : > { %902 = vst.msk [vmem:[%s1703_s15 + $0xc8] sm:$0xff] %vm491_vm0, %v870_v50 }
 0x48e   : > { %v839_v51 = vpop.trf.xlu0 }
 0x48f   : > { %887 = vst.msk [vmem:[%s1703_s15 + $0x50] sm:$0xff] %vm491_vm0, %v839_v51 }
 0x490   : > { %v871_v52 = vpop.trf.xlu1 }
 0x491   : > { %903 = vst.msk [vmem:[%s1703_s15 + $0xd0] sm:$0xff] %vm491_vm0, %v871_v52 }
 0x492   : > { %v840_v53 = vpop.trf.xlu0 }
 0x493   : > { %888 = vst.msk [vmem:[%s1703_s15 + $0x58] sm:$0xff] %vm491_vm0, %v840_v53 }
 0x494   : > { %v872_v6 = vpop.trf.xlu1 }
 0x495   : > { %904 = vst.msk [vmem:[%s1703_s15 + $0xd8] sm:$0xff] %vm491_vm0, %v872_v6 }
 0x496   : > { %v841_v54 = vpop.trf.xlu0 }
 0x497   : > { %889 = vst.msk [vmem:[%s1703_s15 + $0x60] sm:$0xff] %vm491_vm0, %v841_v54 }
 0x498   : > { %v873_v55 = vpop.trf.xlu1 }
 0x499   : > { %905 = vst.msk [vmem:[%s1703_s15 + $0xe0] sm:$0xff] %vm491_vm0, %v873_v55 }
 0x49a   : > { %v842_v56 = vpop.trf.xlu0 }
 0x49b   : > { %890 = vst.msk [vmem:[%s1703_s15 + $0x68] sm:$0xff] %vm491_vm0, %v842_v56 }
 0x49c   : > { %v874_v57 = vpop.trf.xlu1 }
 0x49d   : > { %906 = vst.msk [vmem:[%s1703_s15 + $0xe8] sm:$0xff] %vm491_vm0, %v874_v57 }
 0x49e   : > { %v843_v58 = vpop.trf.xlu0 }
 0x49f   : > { %891 = vst.msk [vmem:[%s1703_s15 + $0x70] sm:$0xff] %vm491_vm0, %v843_v58 }
 0x4a0   : > { %v875_v59 = vpop.trf.xlu1 }
 0x4a1   : > { %907 = vst.msk [vmem:[%s1703_s15 + $0xf0] sm:$0xff] %vm491_vm0, %v875_v59  ;;  %915 = sbr.rel (!%p1549_p4) target bundleno = 1238 (0x4d6), region = 60 }
 0x4a2   : > { %v844_v60 = vpop.trf.xlu0 }
 0x4a3   : > { %892 = vst.msk [vmem:[%s1703_s15 + $0x78] sm:$0xff] %vm491_vm0, %v844_v60 }
 0x4a4   : > { %v876_v61 = vpop.trf.xlu1 }
 0x4a5   : > { %908 = vst.msk [vmem:[%s1703_s15 + $0xf8] sm:$0xff] %vm491_vm0, %v876_v61 }
 0x4a6   : > { %s1928_s30 = smov (!%p918_p8, %s917_s30), 32 }
 0x4a7   : > { %s1270_s23 = sshll.u32 %s1928_s30, 7 }
 0x4a8   : > { %p1273_p9 = scmp.eq.s32.totalorder %s1270_s23, 0 }
 0x4a9   : > { %s1782_s24 = sshrl.u32 (!%p1273_p9), %s1928_s30, 5 }
 0x4aa   : > { %926 = sbr.rel (%p1273_p9) target bundleno = 1238 (0x4d6), region = 64  ;;  %p1274_p10 = scmp.le.s32.totalorder (!%p1273_p9), %s1782_s24, 0 }
 0x4af   : > { %1205 = sbr.rel (%p1274_p10) target bundleno = 1221 (0x4c5), region = 140  ;;  %s1919_s12 = smov (!%p1274_p10), %s1776_s22 }
 0x4b0   : > { %s1920_s17 = smov (!%p1274_p10), %s1703_s15  ;;  %s1791_s18 = smov (!%p1274_p10), 0  }
 0x4b1   : > { %s1793_s25 = smov (!%p1274_p10), 0  }
 0x4b4 LB: >> { %v1051_v62 = vld [vmem:[%s1447_s17] sm:$0xff]  ;;  %v1053_v63 = vld [vmem:[%s1447_s17 + $0x8] sm:$0xff]  ;;  %v1055_v0 = vld [vmem:[%s1447_s17 + $0x10] sm:$0xff]  ;;  %s1115_s26 = sadd.s32 1, %s1451_s18  ;;  %s1045_s25 = sadd.s32 1, %s1455_s25   ;;  %s1455_s25 = sphi %s1793_s25, %s1045_s25   ;;  %s1451_s18 = sphi %s1791_s18, %s1923_s18   ;;  %s1447_s17 = sphi %s1920_s17, %s1922_s17   ;;  %s1443_s12 = sphi %s1919_s12, %s1921_s12  }
 0x4b5   : >> { %1052 = vst [vmem:[%s1443_s12] sm:$0xff] %v1051_v62  ;;  %1054 = vst [vmem:[%s1443_s12 + $0x8] sm:$0xff] %v1053_v63  ;;  %v1057_v1 = vld [vmem:[%s1447_s17 + $0x18] sm:$0xff]  ;;  %v1059_v2 = vld [vmem:[%s1447_s17 + $0x20] sm:$0xff]  ;;  %p1116_p11 = scmp.ge.s32.totalorder %s1115_s26, %s1782_s24  ;;  %p1044_p12 = scmp.ge.s32.totalorder %s1045_s25, %s1782_s24 }
 0x4b6   : >> { %1056 = vst [vmem:[%s1443_s12 + $0x10] sm:$0xff] %v1055_v0  ;;  %v1061_v3 = vld [vmem:[%s1447_s17 + $0x28] sm:$0xff]  ;;  %1058 = vst [vmem:[%s1443_s12 + $0x18] sm:$0xff] %v1057_v1  ;;  %v1063_v4 = vld [vmem:[%s1447_s17 + $0x30] sm:$0xff] }
 0x4b7   : >> { %1060 = vst [vmem:[%s1443_s12 + $0x20] sm:$0xff] %v1059_v2  ;;  %1062 = vst [vmem:[%s1443_s12 + $0x28] sm:$0xff] %v1061_v3  ;;  %v1065_v7 = vld [vmem:[%s1447_s17 + $0x38] sm:$0xff]  ;;  %v1067_v12 = vld [vmem:[%s1447_s17 + $0x40] sm:$0xff]  ;;  %s1930_s26 = smov (%p1116_p11, %s1115_s26), 0 }
 0x4b8   : >> { %1064 = vst [vmem:[%s1443_s12 + $0x30] sm:$0xff] %v1063_v4  ;;  %1066 = vst [vmem:[%s1443_s12 + $0x38] sm:$0xff] %v1065_v7  ;;  %v1069_v15 = vld [vmem:[%s1447_s17 + $0x48] sm:$0xff]  ;;  %v1071_v17 = vld [vmem:[%s1447_s17 + $0x50] sm:$0xff]  ;;  %s1275_s27 = sshll.u32 %s1930_s26, 8  ;;  %s1923_s18 = smov %s1930_s26 }
 0x4b9   : >> { %1068 = vst [vmem:[%s1443_s12 + $0x40] sm:$0xff] %v1067_v12  ;;  %v1073_v18 = vld [vmem:[%s1447_s17 + $0x58] sm:$0xff]  ;;  %1070 = vst [vmem:[%s1443_s12 + $0x48] sm:$0xff] %v1069_v15  ;;  %v1075_v20 = vld [vmem:[%s1447_s17 + $0x60] sm:$0xff]  ;;  %s1849_s28 = scalar_lea.vmem %s1703_s15, %s1275_s27 [#allocation2]   ;;  %s1121_s29 = scalar_lea.vmem %s1776_s22, %s1275_s27  }
 0x4ba   : >> { %1072 = vst [vmem:[%s1443_s12 + $0x50] sm:$0xff] %v1071_v17  ;;  %1074 = vst [vmem:[%s1443_s12 + $0x58] sm:$0xff] %v1073_v18  ;;  %v1077_v9 = vld [vmem:[%s1447_s17 + $0x68] sm:$0xff]  ;;  %v1079_v8 = vld [vmem:[%s1447_s17 + $0x70] sm:$0xff] }
 0x4bb   : >> { %1076 = vst [vmem:[%s1443_s12 + $0x60] sm:$0xff] %v1075_v20  ;;  %1078 = vst [vmem:[%s1443_s12 + $0x68] sm:$0xff] %v1077_v9  ;;  %v1081_v10 = vld [vmem:[%s1447_s17 + $0x78] sm:$0xff]  ;;  %v1083_v13 = vld [vmem:[%s1447_s17 + $0x80] sm:$0xff] }
 0x4bc   : >> { %1080 = vst [vmem:[%s1443_s12 + $0x70] sm:$0xff] %v1079_v8  ;;  %v1085_v5 = vld [vmem:[%s1447_s17 + $0x88] sm:$0xff]  ;;  %1082 = vst [vmem:[%s1443_s12 + $0x78] sm:$0xff] %v1081_v10  ;;  %v1087_v11 = vld [vmem:[%s1447_s17 + $0x90] sm:$0xff] }
 0x4bd   : >> { %1084 = vst [vmem:[%s1443_s12 + $0x80] sm:$0xff] %v1083_v13  ;;  %1086 = vst [vmem:[%s1443_s12 + $0x88] sm:$0xff] %v1085_v5  ;;  %v1089_v14 = vld [vmem:[%s1447_s17 + $0x98] sm:$0xff]  ;;  %v1091_v16 = vld [vmem:[%s1447_s17 + $0xa0] sm:$0xff] }
 0x4be   : >> { %1088 = vst [vmem:[%s1443_s12 + $0x90] sm:$0xff] %v1087_v11  ;;  %1090 = vst [vmem:[%s1443_s12 + $0x98] sm:$0xff] %v1089_v14  ;;  %v1093_v19 = vld [vmem:[%s1447_s17 + $0xa8] sm:$0xff]  ;;  %v1095_v21 = vld [vmem:[%s1447_s17 + $0xb0] sm:$0xff] }
 0x4bf   : >> { %1092 = vst [vmem:[%s1443_s12 + $0xa0] sm:$0xff] %v1091_v16  ;;  %v1097_v22 = vld [vmem:[%s1447_s17 + $0xb8] sm:$0xff]  ;;  %1094 = vst [vmem:[%s1443_s12 + $0xa8] sm:$0xff] %v1093_v19  ;;  %v1099_v23 = vld [vmem:[%s1447_s17 + $0xc0] sm:$0xff] }
 0x4c0   : >> { %1096 = vst [vmem:[%s1443_s12 + $0xb0] sm:$0xff] %v1095_v21  ;;  %1098 = vst [vmem:[%s1443_s12 + $0xb8] sm:$0xff] %v1097_v22  ;;  %v1101_v24 = vld [vmem:[%s1447_s17 + $0xc8] sm:$0xff]  ;;  %v1103_v25 = vld [vmem:[%s1447_s17 + $0xd0] sm:$0xff]  ;;  %1047 = sbr.rel (!%p1044_p12) target bundleno = 1204 (0x4b4), region = 146 }
 0x4c1   : >> { %1100 = vst [vmem:[%s1443_s12 + $0xc0] sm:$0xff] %v1099_v23  ;;  %1102 = vst [vmem:[%s1443_s12 + $0xc8] sm:$0xff] %v1101_v24  ;;  %v1105_v26 = vld [vmem:[%s1447_s17 + $0xd8] sm:$0xff]  ;;  %v1107_v27 = vld [vmem:[%s1447_s17 + $0xe0] sm:$0xff] }
 0x4c2   : >> { %1104 = vst [vmem:[%s1443_s12 + $0xd0] sm:$0xff] %v1103_v25  ;;  %v1109_v28 = vld [vmem:[%s1447_s17 + $0xe8] sm:$0xff]  ;;  %1106 = vst [vmem:[%s1443_s12 + $0xd8] sm:$0xff] %v1105_v26  ;;  %v1111_v29 = vld [vmem:[%s1447_s17 + $0xf0] sm:$0xff] }
 0x4c3   : >> { %1108 = vst [vmem:[%s1443_s12 + $0xe0] sm:$0xff] %v1107_v27  ;;  %1110 = vst [vmem:[%s1443_s12 + $0xe8] sm:$0xff] %v1109_v28  ;;  %v1113_v30 = vld [vmem:[%s1447_s17 + $0xf8] sm:$0xff]  ;;  %s1922_s17 = smov %s1849_s28 }
 0x4c4   : >> { %1112 = vst [vmem:[%s1443_s12 + $0xf0] sm:$0xff] %v1111_v29  ;;  %1114 = vst [vmem:[%s1443_s12 + $0xf8] sm:$0xff] %v1113_v30  ;;  %s1921_s12 = smov %s1121_s29 }
 0x4c5 PF: > { %s1890_s11 = sand.u32 31, %s1928_s30   ;;  %s1286_s14 = sshll.u32 %s1782_s24, 8 }
 0x4c6   : > { %s1126_s19 = scalar_lea.vmem %s1703_s15, %s1286_s14 [#allocation2]   ;;  %s1128_s20 = scalar_lea.vmem %s1776_s22, %s1286_s14  }
 0x4c7   : > { %p1280_p13 = scmp.le.s32.totalorder %s1890_s11, 0 }
 0x4c8   : > { %s1457_s21 = smov (!%p1280_p13), %s1128_s20   ;;  %s1461_s23 = smov (!%p1280_p13), %s1126_s19  }
 0x4c9   : > { %1219 = sbr.rel (%p1280_p13) target bundleno = 1238 (0x4d6), region = 151  ;;  %s1465_s27 = smov (!%p1280_p13), 0  }
 0x4ca   : > { %s1469_s26 = smov (!%p1280_p13), 0  }
 0x4ce LB: >> { %v1138_v31 = vld [vmem:[%s1463_s23] sm:$0xff]  ;;  %s1140_s30 = sadd.s32 1, %s1467_s27  ;;  %s1132_s26 = sadd.s32 1, %s1471_s26   ;;  %s1471_s26 = sphi %s1469_s26, %s1132_s26   ;;  %s1467_s27 = sphi %s1465_s27, %s1466_s27   ;;  %s1463_s23 = sphi %s1461_s23, %s1145_s23   ;;  %s1459_s21 = sphi %s1457_s21, %s1146_s21  }
 0x4cf   : >> { %1139 = vst [vmem:[%s1459_s21] sm:$0xff] %v1138_v31  ;;  %p1141_p0 = scmp.ge.s32.totalorder %s1140_s30, %s1890_s11  ;;  %p1131_p1 = scmp.ge.s32.totalorder %s1132_s26, %s1890_s11 }
 0x4d1   : >> { %s1932_s30 = smov (%p1141_p0, %s1140_s30), 0  ;;  %1134 = sbr.rel (!%p1131_p1) target bundleno = 1230 (0x4ce), region = 157 }
 0x4d2   : >> { %s1281_s15 = sshll.u32 %s1932_s30, 3  ;;  %s1466_s27 = smov %s1932_s30  }
 0x4d3   : >> { %s1145_s23 = scalar_lea.vmem %s1126_s19, %s1281_s15 [#allocation2]   ;;  %s1146_s21 = scalar_lea.vmem %s1128_s20, %s1281_s15  }
 0x4d6 PF: > { %p16_p2 = scmp.ge.s32.totalorder %s1539_s13, 4   ;;  %s1924_s30 = smov %s1435_s10 }
 0x4d7   : > { %s1925_s10 = smov %s1547_s16  ;;  %s1926_s11 = smov %s1539_s13 }
 0x4d8   :  { %18 = sbr.rel (!%p16_p2) target bundleno = 2 (0x2), region = 168 }

</bundles_post_ra>
